<compile_context>
chip_gen: v7x
topology: tpu7x:2x2x1
jax: 0.10.0
libtpu: 0.0.40
codegen_flags: <defaults>
</compile_context>

<pallas_src>
import functools

import jax
import jax.numpy as jnp
import numpy as np
from jax.experimental import pallas as pl
from jax.experimental.pallas import tpu as pltpu

_HI = jax.lax.Precision.HIGHEST        # tiny conv matmuls stay exact-f32
_VMEM_LIMIT = 32 * 1024 * 1024         # safe scoped limit on v5e/v6e/v7x
_FUSED_BUDGET = 10 * 1024 * 1024       # fused path only if est. VMEM below this


# --------------------------------------------------------------------------
# Exact-ish data @ selector matmul using native bf16 MXU passes.
# --------------------------------------------------------------------------
def _split_dot(a, b_bf16):
    """a @ b for a 0/1 (bf16-exact) right operand, f32 accumulation.

    The f32 left operand is split into hi+lo bf16 terms, so both MXU passes run
    at native bf16 speed while keeping ~2^-17 relative accuracy (vs ~2^-9 for a
    plain bf16 demotion, or 6-9 passes for HIGHEST-f32 x HIGHEST-f32).
    bf16 left operands take the single-pass fast path."""
    if a.dtype == jnp.bfloat16:
        return jnp.dot(a, b_bf16, preferred_element_type=jnp.float32)
    a = a.astype(jnp.float32)
    hi = a.astype(jnp.bfloat16)
    lo = (a - hi.astype(jnp.float32)).astype(jnp.bfloat16)
    return (jnp.dot(hi, b_bf16, preferred_element_type=jnp.float32) +
            jnp.dot(lo, b_bf16, preferred_element_type=jnp.float32))


def _attention_math(pooled, w1, b1, w2, b2, w3, b3, is_h):
    """conv1(+folded BN) -> h_swish -> conv2/conv3 -> sigmoid on the combined
    (C, H+W) pooled map.  Columns < H come from conv2, the rest from conv3."""
    y = jnp.dot(w1, pooled, preferred_element_type=jnp.float32,
                precision=_HI) + b1                       # (mip, S)
    y = y * (jnp.clip(y + 3.0, 0.0, 6.0) * (1.0 / 6.0))   # h_swish
    a2 = jax.nn.sigmoid(jnp.dot(w2, y, preferred_element_type=jnp.float32,
                                precision=_HI) + b2)      # (C, S)
    a3 = jax.nn.sigmoid(jnp.dot(w3, y, preferred_element_type=jnp.float32,
                                precision=_HI) + b3)      # (C, S)
    return jnp.where(is_h, a2, a3)                        # (C, S)


# --------------------------------------------------------------------------
# Fused single-pass kernel: pooling + attention + gate, x read once.
# --------------------------------------------------------------------------
def fused_coord_att_kernel(x_ref, sel_ref, selT_ref, w1_ref, b1_ref, w2_ref,
                           b2_ref, w3_ref, b3_ref, o_ref, *, H, W):
    S = sel_ref.shape[1]
    x = x_ref[0]                                          # (C, HWp)
    xf = x.astype(jnp.float32)

    # Pooled sums over the whole (padded) spatial axis via one selector matmul.
    pooled = _split_dot(xf, sel_ref[...])                 # (C, S) f32

    col = jax.lax.broadcasted_iota(jnp.int32, (1, S), 1)
    is_h = col < H
    pooled = pooled * jnp.where(is_h, 1.0 / W, 1.0 / H)   # means over W / over H

    att = _attention_math(pooled, w1_ref[...], b1_ref[...], w2_ref[...],
                          b2_ref[...], w3_ref[...], b3_ref[...], is_h)

    att_h = jnp.where(is_h, att, 0.0)                     # (C, S)
    att_w = jnp.where(is_h, 0.0, att)
    selT = selT_ref[...]                                  # (S, HWp) bf16
    gate = _split_dot(att_h, selT) * _split_dot(att_w, selT)   # (C, HWp) f32

    o_ref[0] = (xf * gate).astype(o_ref.dtype)


# --------------------------------------------------------------------------
# Two-pass fallback.  Pass 1: pooled means + tiny attention math.
# --------------------------------------------------------------------------
def pool_att_kernel(x_ref, sel_ref, w1_ref, b1_ref, w2_ref, b2_ref, w3_ref,
                    b3_ref, att_ref, acc_ref, *, H, W):
    p = pl.program_id(1)

    @pl.when(p == 0)
    def _():
        acc_ref[...] = jnp.zeros_like(acc_ref)

    # Single fused selector matmul for both pooled branches (C, H+W).
    acc_ref[...] += _split_dot(x_ref[0], sel_ref[...])

    @pl.when(p == pl.num_programs(1) - 1)
    def _():
        S = acc_ref.shape[1]
        col = jax.lax.broadcasted_iota(jnp.int32, (1, S), 1)
        is_h = col < H
        pooled = acc_ref[...] * jnp.where(is_h, 1.0 / W, 1.0 / H)
        att_ref[0] = _attention_math(pooled, w1_ref[...], b1_ref[...],
                                     w2_ref[...], b2_ref[...], w3_ref[...],
                                     b3_ref[...], is_h)


# Pass 2: lane-dense broadcast-gate multiply, fully parallel tiles.
def gate_kernel(x_ref, att_ref, selT_ref, o_ref, *, H):
    S = att_ref.shape[2]
    att = att_ref[0]                                      # (C, S) f32
    col = jax.lax.broadcasted_iota(jnp.int32, (1, S), 1)
    is_h = col < H
    att_h = jnp.where(is_h, att, 0.0)
    att_w = jnp.where(is_h, 0.0, att)
    selT = selT_ref[...]                                  # (S, PB) bf16
    gate = _split_dot(att_h, selT) * _split_dot(att_w, selT)   # (C, PB) f32
    o_ref[0] = (x_ref[0].astype(jnp.float32) * gate).astype(o_ref.dtype)


# --------------------------------------------------------------------------
# Wrapper helpers
# --------------------------------------------------------------------------
def _build_selectors(H, W, HWp):
    """0/1 selector (HWp, H+W) and its transpose, bf16 (exact); rows for padded
    flat positions (p >= H*W) are all zero, so padding never pollutes pooling."""
    S = H + W
    HW = H * W
    p = jnp.arange(HWp, dtype=jnp.int32)
    valid = p < HW
    h_idx = jnp.where(valid, p // W, -1)
    w_idx = jnp.where(valid, p % W, -1)
    col = jnp.arange(S, dtype=jnp.int32)
    sel_h = (col[None, :] < H) & (h_idx[:, None] == col[None, :])
    sel_w = (col[None, :] >= H) & (w_idx[:, None] == (col[None, :] - H))
    sel = (sel_h | sel_w).astype(jnp.bfloat16)            # (HWp, S)
    return sel, sel.T                                     # and (S, HWp)


def _pick_block(HWp, C, S, itemsize):
    """Flat-spatial tile: a multiple of 128 dividing HWp, sized so the per-step
    working set (double-buffered x/out tiles, selector tiles, f32 gate and
    bf16-split temporaries) stays well inside every generation's scoped VMEM."""
    per_pos = 4 * C * itemsize + 4 * S * 2 + 4 * C * 4
    target = 6 * 1024 * 1024
    cap = max(128, min(HWp, (target // max(per_pos, 1)) // 128 * 128))
    for pb in range(cap, 127, -128):
        if HWp % pb == 0:
            return pb
    return 128                                            # 128 always divides HWp


def coord_att(x, w1f, b1f, w2, b2, w3, b3, *, use_fused=None, block_override=None):
    """CoordAtt forward.  w1f/b1f are conv1 weights with BatchNorm folded in."""
    N, C, H, W = x.shape
    assert w2.shape[0] == C and w3.shape[0] == C, "gate needs oup == inp"
    S = H + W
    HW = H * W
    HWp = ((HW + 127) // 128) * 128                       # lane-dense, padded
    itemsize = jnp.dtype(x.dtype).itemsize

    x_flat = x.reshape(N, C, HW)
    if HWp != HW:
        x_flat = jnp.pad(x_flat, ((0, 0), (0, 0), (0, HWp - HW)))
    sel, selT = _build_selectors(H, W, HWp)

    def rep(shape):
        nd = len(shape)

        def idx(*_):
            return (0,) * nd
        return pl.BlockSpec(shape, idx)

    weight_specs = [rep(w1f.shape), rep(b1f.shape), rep(w2.shape), rep(b2.shape),
                    rep(w3.shape), rep(b3.shape)]

    # Estimated fused-path VMEM: 2x(in)+2x(out) buffers + sel/selT + f32 temps.
    fused_bytes = (4 * C * HWp * itemsize + 8 * HWp * S + 12 * C * HWp)
    if use_fused is None:
        use_fused = fused_bytes <= _FUSED_BUDGET

    if use_fused:
        out_flat = pl.pallas_call(
            functools.partial(fused_coord_att_kernel, H=H, W=W),
            grid=(N,),
            in_specs=[pl.BlockSpec((1, C, HWp), lambda n: (n, 0, 0)),
                      pl.BlockSpec((HWp, S), lambda n: (0, 0)),
                      pl.BlockSpec((S, HWp), lambda n: (0, 0))] + weight_specs,
            out_specs=pl.BlockSpec((1, C, HWp), lambda n: (n, 0, 0)),
            out_shape=jax.ShapeDtypeStruct((N, C, HWp), x.dtype),
            compiler_params=pltpu.CompilerParams(
                dimension_semantics=("parallel",),
                vmem_limit_bytes=_VMEM_LIMIT),
            cost_estimate=pl.CostEstimate(
                flops=8 * N * C * HW * S + 2 * N * C * HW,
                transcendentals=2 * N * C * S,
                bytes_accessed=2 * N * C * HWp * itemsize + 4 * HWp * S),
        )(x_flat, sel, selT, w1f, b1f, w2, b2, w3, b3)
    else:
        PB = block_override or _pick_block(HWp, C, S, itemsize)
        assert HWp % PB == 0 and PB % 128 == 0
        nP = HWp // PB

        # ---- Pass 1: pooled means + attention vectors (tiny combined output).
        att = pl.pallas_call(
            functools.partial(pool_att_kernel, H=H, W=W),
            grid=(N, nP),
            in_specs=[pl.BlockSpec((1, C, PB), lambda n, p: (n, 0, p)),
                      pl.BlockSpec((PB, S), lambda n, p: (p, 0))] + weight_specs,
            out_specs=pl.BlockSpec((1, C, S), lambda n, p: (n, 0, 0)),
            out_shape=jax.ShapeDtypeStruct((N, C, S), jnp.float32),
            scratch_shapes=[pltpu.VMEM((C, S), jnp.float32)],
            compiler_params=pltpu.CompilerParams(
                dimension_semantics=("parallel", "arbitrary"),
                vmem_limit_bytes=_VMEM_LIMIT),
            cost_estimate=pl.CostEstimate(
                flops=4 * N * C * HW * S,
                transcendentals=2 * N * C * S,
                bytes_accessed=N * C * HWp * itemsize + 2 * N * HWp * S
                + 4 * N * C * S),
        )(x_flat, sel, w1f, b1f, w2, b2, w3, b3)

        # ---- Pass 2: memory-bound gate multiply, fully parallel tiles.
        out_flat = pl.pallas_call(
            functools.partial(gate_kernel, H=H),
            grid=(N, nP),
            in_specs=[pl.BlockSpec((1, C, PB), lambda n, p: (n, 0, p)),
                      pl.BlockSpec((1, C, S), lambda n, p: (n, 0, 0)),
                      pl.BlockSpec((S, PB), lambda n, p: (0, p))],
            out_specs=pl.BlockSpec((1, C, PB), lambda n, p: (n, 0, p)),
            out_shape=jax.ShapeDtypeStruct((N, C, HWp), x.dtype),
            compiler_params=pltpu.CompilerParams(
                dimension_semantics=("parallel", "parallel"),
                vmem_limit_bytes=_VMEM_LIMIT),
            cost_estimate=pl.CostEstimate(
                flops=4 * N * C * HW * S + 2 * N * C * HW,
                transcendentals=0,
                bytes_accessed=2 * N * C * HWp * itemsize + 2 * N * HWp * S
                + 4 * N * C * S),
        )(x_flat, att, selT)

    out = out_flat if HWp == HW else out_flat[:, :, :HW]
    return out.reshape(N, C, H, W)


# --------------------------------------------------------------------------
# Parameters (synthetic, deterministic) + general inference-mode BN fold.
# --------------------------------------------------------------------------
def make_coord_att_params(inp, oup, groups=32, dtype=jnp.float32, seed=42):
    mip = max(8, inp // groups)
    ks = jax.random.split(jax.random.PRNGKey(seed), 10)
    return dict(
        w1=0.3 * jax.random.normal(ks[0], (mip, inp), dtype),
        b1=0.1 * jax.random.normal(ks[1], (mip, 1), dtype),
        bn_gamma=1.0 + 0.1 * jax.random.normal(ks[2], (mip, 1), dtype),
        bn_beta=0.1 * jax.random.normal(ks[3], (mip, 1), dtype),
        bn_mean=0.1 * jax.random.normal(ks[4], (mip, 1), dtype),
        bn_var=1.0 + 0.1 * jax.random.uniform(ks[5], (mip, 1), dtype),
        w2=0.3 * jax.random.normal(ks[6], (oup, mip), dtype),
        b2=0.1 * jax.random.normal(ks[7], (oup, 1), dtype),
        w3=0.3 * jax.random.normal(ks[8], (oup, mip), dtype),
        b3=0.1 * jax.random.normal(ks[9], (oup, 1), dtype),
    )


def fold_bn_into_conv1(params, eps=1e-5):
    """Inference-mode fold: scale = g/sqrt(var+eps), shift = b - mean*scale."""
    scale = params["bn_gamma"] / jnp.sqrt(params["bn_var"] + eps)   # (mip, 1)
    shift = params["bn_beta"] - params["bn_mean"] * scale
    return params["w1"] * scale, params["b1"] * scale + shift


# --------------------------------------------------------------------------
# Pure-JAX reference of the PyTorch forward (unfolded BN, f32 math).
# --------------------------------------------------------------------------
def coord_att_reference(x, params, eps=1e-5):
    xf = x.astype(jnp.float32)
    H = x.shape[2]
    x_h = jnp.mean(xf, axis=3)                            # (N, C, H)
    x_w = jnp.mean(xf, axis=2)                            # (N, C, W)
    y = jnp.concatenate([x_h, x_w], axis=2)               # (N, C, H+W)
    y = jnp.einsum("mc,ncs->nms", params["w1"], y, precision=_HI) + params["b1"][None]
    y = ((y - params["bn_mean"][None]) / jnp.sqrt(params["bn_var"][None] + eps)
         * params["bn_gamma"][None] + params["bn_beta"][None])
    y = y * (jnp.clip(y + 3.0, 0.0, 6.0) / 6.0)           # h_swish
    a_h, a_w = y[:, :, :H], y[:, :, H:]
    att_h = jax.nn.sigmoid(jnp.einsum("om,nms->nos", params["w2"], a_h,
                                      precision=_HI) + params["b2"][None])
    att_w = jax.nn.sigmoid(jnp.einsum("om,nms->nos", params["w3"], a_w,
                                      precision=_HI) + params["b3"][None])
    return (xf * att_w[:, :, None, :] * att_h[:, :, :, None]).astype(x.dtype)


if __name__ == "__main__":
    configs = [
        (2, 4, 16, 16),   # H*W multiple of 128 (primary test shape)
        (2, 4, 14, 10),   # H*W NOT a multiple of 128 -> exercises spatial pad
    ]
    for (N, C, H, W) in configs:
        x = jax.random.normal(jax.random.PRNGKey(0), (N, C, H, W), jnp.float32)
        params = make_coord_att_params(inp=C, oup=C, groups=32)
        w1f, b1f = fold_bn_into_conv1(params)
        ref = coord_att_reference(x, params)
        for use_fused, blk in ((True, None), (False, 128)):
            run = jax.jit(functools.partial(coord_att, use_fused=use_fused,
                                            block_override=blk))
            out = jax.block_until_ready(
                run(x, w1f, b1f, params["w2"], params["b2"],
                    params["w3"], params["b3"]))
            np.testing.assert_allclose(np.asarray(out), np.asarray(ref),
                                       rtol=2e-4, atol=5e-5)
    print("KERNEL_OK")
</pallas_src>

<mosaic_0001>
module attributes {stable_mosaic.version = 11 : i64} {
  func.func @fused_coord_att_kernel(%arg0: i32, %arg1: memref<1x4x256xf32, #tpu.memory_space<vmem>>, %arg2: memref<256x32xbf16, #tpu.memory_space<vmem>>, %arg3: memref<32x256xbf16, #tpu.memory_space<vmem>>, %arg4: memref<8x4xf32, #tpu.memory_space<vmem>>, %arg5: memref<8x1xf32, #tpu.memory_space<vmem>>, %arg6: memref<4x8xf32, #tpu.memory_space<vmem>>, %arg7: memref<4x1xf32, #tpu.memory_space<vmem>>, %arg8: memref<4x8xf32, #tpu.memory_space<vmem>>, %arg9: memref<4x1xf32, #tpu.memory_space<vmem>>, %arg10: memref<1x4x256xf32, #tpu.memory_space<vmem>>) attributes {dimension_semantics = [#tpu.dimension_semantics<parallel>], iteration_bounds = array<i64: 2>, scalar_prefetch = 0 : i64, scratch_operands = 0 : i64, tpu.core_type = #tpu.core_type<tc>, window_params = [{transform_indices = @transform_0, window_bounds = array<i64: 1, 4, 256>}, {pipeline_mode = #tpu.pipeline_mode<synchronous>, transform_indices = @transform_1, window_bounds = array<i64: 256, 32>}, {pipeline_mode = #tpu.pipeline_mode<synchronous>, transform_indices = @transform_2, window_bounds = array<i64: 32, 256>}, {pipeline_mode = #tpu.pipeline_mode<synchronous>, transform_indices = @transform_3, window_bounds = array<i64: 8, 4>}, {pipeline_mode = #tpu.pipeline_mode<synchronous>, transform_indices = @transform_4, window_bounds = array<i64: 8, 1>}, {pipeline_mode = #tpu.pipeline_mode<synchronous>, transform_indices = @transform_5, window_bounds = array<i64: 4, 8>}, {pipeline_mode = #tpu.pipeline_mode<synchronous>, transform_indices = @transform_6, window_bounds = array<i64: 4, 1>}, {pipeline_mode = #tpu.pipeline_mode<synchronous>, transform_indices = @transform_7, window_bounds = array<i64: 4, 8>}, {pipeline_mode = #tpu.pipeline_mode<synchronous>, transform_indices = @transform_8, window_bounds = array<i64: 4, 1>}, {transform_indices = @transform_9, window_bounds = array<i64: 1, 4, 256>}]} {
    %c0 = arith.constant 0 : index
    %c0_0 = arith.constant 0 : index
    %c0_1 = arith.constant 0 : index
    %0 = vector.load %arg1[%c0, %c0_0, %c0_1] : memref<1x4x256xf32, #tpu.memory_space<vmem>>, vector<1x4x256xf32>
    %1 = vector.shape_cast %0 : vector<1x4x256xf32> to vector<4x256xf32>
    %c0_2 = arith.constant 0 : index
    %c0_3 = arith.constant 0 : index
    %2 = vector.load %arg2[%c0_2, %c0_3] : memref<256x32xbf16, #tpu.memory_space<vmem>>, vector<256x32xbf16>
    %3 = arith.truncf %1 : vector<4x256xf32> to vector<4x256xbf16>
    %4 = arith.extf %3 : vector<4x256xbf16> to vector<4x256xf32>
    %5 = arith.subf %1, %4 : vector<4x256xf32>
    %6 = arith.truncf %5 : vector<4x256xf32> to vector<4x256xbf16>
    %cst = arith.constant dense<0.000000e+00> : vector<4x32xf32>
    %7 = tpu.matmul %3, %2, %cst {dimension_numbers = #tpu.dot_dimension_numbers<[1], [0], [0], [1], [0, 0, 1, 1], [], []>} : vector<4x256xbf16>, vector<256x32xbf16>, vector<4x32xf32> -> vector<4x32xf32>
    %cst_4 = arith.constant dense<0.000000e+00> : vector<4x32xf32>
    %8 = tpu.matmul %6, %2, %cst_4 {dimension_numbers = #tpu.dot_dimension_numbers<[1], [0], [0], [1], [0, 0, 1, 1], [], []>} : vector<4x256xbf16>, vector<256x32xbf16>, vector<4x32xf32> -> vector<4x32xf32>
    %9 = arith.addf %7, %8 : vector<4x32xf32>
    %10 = tpu.iota {dimensions = array<i32: 1>} : vector<1x32xi32>
    %c16_i32 = arith.constant 16 : i32
    %11 = vector.broadcast %c16_i32 : i32 to vector<1x32xi32>
    %12 = arith.cmpi slt, %10, %11 : vector<1x32xi32>
    %cst_5 = arith.constant 6.250000e-02 : f32
    %cst_6 = arith.constant 6.250000e-02 : f32
    %13 = vector.broadcast %cst_5 : f32 to vector<1x32xf32>
    %14 = vector.broadcast %cst_6 : f32 to vector<1x32xf32>
    %15 = arith.select %12, %13, %14 : vector<1x32xi1>, vector<1x32xf32>
    %16 = vector.broadcast %15 : vector<1x32xf32> to vector<4x32xf32>
    %17 = arith.mulf %9, %16 : vector<4x32xf32>
    %c0_7 = arith.constant 0 : index
    %c0_8 = arith.constant 0 : index
    %18 = vector.load %arg4[%c0_7, %c0_8] : memref<8x4xf32, #tpu.memory_space<vmem>>, vector<8x4xf32>
    %c0_9 = arith.constant 0 : index
    %c0_10 = arith.constant 0 : index
    %19 = vector.load %arg5[%c0_9, %c0_10] : memref<8x1xf32, #tpu.memory_space<vmem>>, vector<8x1xf32>
    %c0_11 = arith.constant 0 : index
    %c0_12 = arith.constant 0 : index
    %20 = vector.load %arg6[%c0_11, %c0_12] : memref<4x8xf32, #tpu.memory_space<vmem>>, vector<4x8xf32>
    %c0_13 = arith.constant 0 : index
    %c0_14 = arith.constant 0 : index
    %21 = vector.load %arg7[%c0_13, %c0_14] : memref<4x1xf32, #tpu.memory_space<vmem>>, vector<4x1xf32>
    %c0_15 = arith.constant 0 : index
    %c0_16 = arith.constant 0 : index
    %22 = vector.load %arg8[%c0_15, %c0_16] : memref<4x8xf32, #tpu.memory_space<vmem>>, vector<4x8xf32>
    %c0_17 = arith.constant 0 : index
    %c0_18 = arith.constant 0 : index
    %23 = vector.load %arg9[%c0_17, %c0_18] : memref<4x1xf32, #tpu.memory_space<vmem>>, vector<4x1xf32>
    %cst_19 = arith.constant dense<0.000000e+00> : vector<8x32xf32>
    %24 = tpu.matmul %18, %17, %cst_19 {dimension_numbers = #tpu.dot_dimension_numbers<[1], [0], [0], [1], [0, 0, 1, 1], [], []>, precision = #tpu.contract_precision<fp32>} : vector<8x4xf32>, vector<4x32xf32>, vector<8x32xf32> -> vector<8x32xf32>
    %25 = vector.broadcast %19 : vector<8x1xf32> to vector<8x32xf32>
    %26 = arith.addf %24, %25 : vector<8x32xf32>
    %cst_20 = arith.constant 3.000000e+00 : f32
    %27 = vector.broadcast %cst_20 : f32 to vector<8x32xf32>
    %28 = arith.addf %26, %27 : vector<8x32xf32>
    %cst_21 = arith.constant 0.000000e+00 : f32
    %cst_22 = arith.constant 6.000000e+00 : f32
    %29 = vector.broadcast %cst_21 : f32 to vector<8x32xf32>
    %30 = arith.maximumf %29, %28 : vector<8x32xf32>
    %31 = vector.broadcast %cst_22 : f32 to vector<8x32xf32>
    %32 = arith.minimumf %31, %30 : vector<8x32xf32>
    %cst_23 = arith.constant 0.166666672 : f32
    %33 = vector.broadcast %cst_23 : f32 to vector<8x32xf32>
    %34 = arith.mulf %32, %33 : vector<8x32xf32>
    %35 = arith.mulf %26, %34 : vector<8x32xf32>
    %cst_24 = arith.constant dense<0.000000e+00> : vector<4x32xf32>
    %36 = tpu.matmul %20, %35, %cst_24 {dimension_numbers = #tpu.dot_dimension_numbers<[1], [0], [0], [1], [0, 0, 1, 1], [], []>, precision = #tpu.contract_precision<fp32>} : vector<4x8xf32>, vector<8x32xf32>, vector<4x32xf32> -> vector<4x32xf32>
    %37 = vector.broadcast %21 : vector<4x1xf32> to vector<4x32xf32>
    %38 = arith.addf %36, %37 : vector<4x32xf32>
    %39 = arith.negf %38 : vector<4x32xf32>
    %40 = math.exp %39 : vector<4x32xf32>
    %cst_25 = arith.constant 1.000000e+00 : f32
    %41 = vector.broadcast %cst_25 : f32 to vector<4x32xf32>
    %42 = arith.addf %41, %40 : vector<4x32xf32>
    %43 = arith.divf %41, %42 : vector<4x32xf32>
    %cst_26 = arith.constant dense<0.000000e+00> : vector<4x32xf32>
    %44 = tpu.matmul %22, %35, %cst_26 {dimension_numbers = #tpu.dot_dimension_numbers<[1], [0], [0], [1], [0, 0, 1, 1], [], []>, precision = #tpu.contract_precision<fp32>} : vector<4x8xf32>, vector<8x32xf32>, vector<4x32xf32> -> vector<4x32xf32>
    %45 = vector.broadcast %23 : vector<4x1xf32> to vector<4x32xf32>
    %46 = arith.addf %44, %45 : vector<4x32xf32>
    %47 = arith.negf %46 : vector<4x32xf32>
    %48 = math.exp %47 : vector<4x32xf32>
    %cst_27 = arith.constant 1.000000e+00 : f32
    %49 = vector.broadcast %cst_27 : f32 to vector<4x32xf32>
    %50 = arith.addf %49, %48 : vector<4x32xf32>
    %51 = arith.divf %49, %50 : vector<4x32xf32>
    %52 = vector.shape_cast %12 : vector<1x32xi1> to vector<1x32xi1>
    %53 = vector.broadcast %52 : vector<1x32xi1> to vector<4x32xi1>
    %54 = arith.select %53, %43, %51 : vector<4x32xi1>, vector<4x32xf32>
    %cst_28 = arith.constant 0.000000e+00 : f32
    %55 = vector.shape_cast %12 : vector<1x32xi1> to vector<1x32xi1>
    %56 = vector.broadcast %55 : vector<1x32xi1> to vector<4x32xi1>
    %57 = vector.broadcast %cst_28 : f32 to vector<4x32xf32>
    %58 = arith.select %56, %54, %57 : vector<4x32xi1>, vector<4x32xf32>
    %cst_29 = arith.constant 0.000000e+00 : f32
    %59 = vector.shape_cast %12 : vector<1x32xi1> to vector<1x32xi1>
    %60 = vector.broadcast %59 : vector<1x32xi1> to vector<4x32xi1>
    %61 = vector.broadcast %cst_29 : f32 to vector<4x32xf32>
    %62 = arith.select %60, %61, %54 : vector<4x32xi1>, vector<4x32xf32>
    %c0_30 = arith.constant 0 : index
    %c0_31 = arith.constant 0 : index
    %63 = vector.load %arg3[%c0_30, %c0_31] : memref<32x256xbf16, #tpu.memory_space<vmem>>, vector<32x256xbf16>
    %64 = arith.truncf %58 : vector<4x32xf32> to vector<4x32xbf16>
    %65 = arith.extf %64 : vector<4x32xbf16> to vector<4x32xf32>
    %66 = arith.subf %58, %65 : vector<4x32xf32>
    %67 = arith.truncf %66 : vector<4x32xf32> to vector<4x32xbf16>
    %cst_32 = arith.constant dense<0.000000e+00> : vector<4x256xf32>
    %68 = tpu.matmul %64, %63, %cst_32 {dimension_numbers = #tpu.dot_dimension_numbers<[1], [0], [0], [1], [0, 0, 1, 1], [], []>} : vector<4x32xbf16>, vector<32x256xbf16>, vector<4x256xf32> -> vector<4x256xf32>
    %cst_33 = arith.constant dense<0.000000e+00> : vector<4x256xf32>
    %69 = tpu.matmul %67, %63, %cst_33 {dimension_numbers = #tpu.dot_dimension_numbers<[1], [0], [0], [1], [0, 0, 1, 1], [], []>} : vector<4x32xbf16>, vector<32x256xbf16>, vector<4x256xf32> -> vector<4x256xf32>
    %70 = arith.addf %68, %69 : vector<4x256xf32>
    %71 = arith.truncf %62 : vector<4x32xf32> to vector<4x32xbf16>
    %72 = arith.extf %71 : vector<4x32xbf16> to vector<4x32xf32>
    %73 = arith.subf %62, %72 : vector<4x32xf32>
    %74 = arith.truncf %73 : vector<4x32xf32> to vector<4x32xbf16>
    %cst_34 = arith.constant dense<0.000000e+00> : vector<4x256xf32>
    %75 = tpu.matmul %71, %63, %cst_34 {dimension_numbers = #tpu.dot_dimension_numbers<[1], [0], [0], [1], [0, 0, 1, 1], [], []>} : vector<4x32xbf16>, vector<32x256xbf16>, vector<4x256xf32> -> vector<4x256xf32>
    %cst_35 = arith.constant dense<0.000000e+00> : vector<4x256xf32>
    %76 = tpu.matmul %74, %63, %cst_35 {dimension_numbers = #tpu.dot_dimension_numbers<[1], [0], [0], [1], [0, 0, 1, 1], [], []>} : vector<4x32xbf16>, vector<32x256xbf16>, vector<4x256xf32> -> vector<4x256xf32>
    %77 = arith.addf %75, %76 : vector<4x256xf32>
    %78 = arith.mulf %70, %77 : vector<4x256xf32>
    %79 = arith.mulf %1, %78 : vector<4x256xf32>
    %c0_36 = arith.constant 0 : index
    %c0_37 = arith.constant 0 : index
    %c0_38 = arith.constant 0 : index
    %80 = vector.load %arg10[%c0_36, %c0_37, %c0_38] : memref<1x4x256xf32, #tpu.memory_space<vmem>>, vector<1x4x256xf32>
    %81 = vector.shape_cast %80 : vector<1x4x256xf32> to vector<4x256xf32>
    %82 = vector.shape_cast %79 : vector<4x256xf32> to vector<1x4x256xf32>
    tpu.vector_store %arg10[%c0_36, %c0_37, %c0_38], %82 {strides = array<i32>} : memref<1x4x256xf32, #tpu.memory_space<vmem>>, vector<1x4x256xf32>,
    return
  }
  func.func @transform_0(%arg0: i32) -> (i32, i32, i32) {
    %c0_i32 = arith.constant 0 : i32
    %c0_i32_0 = arith.constant 0 : i32
    %c0_i32_1 = arith.constant 0 : i32
    return %arg0, %c0_i32, %c0_i32_0 : i32, i32, i32
  }
  func.func @transform_1(%arg0: i32) -> (i32, i32) {
    %c0_i32 = arith.constant 0 : i32
    %c0_i32_0 = arith.constant 0 : i32
    %c0_i32_1 = arith.constant 0 : i32
    return %c0_i32, %c0_i32_0 : i32, i32
  }
  func.func @transform_2(%arg0: i32) -> (i32, i32) {
    %c0_i32 = arith.constant 0 : i32
    %c0_i32_0 = arith.constant 0 : i32
    %c0_i32_1 = arith.constant 0 : i32
    return %c0_i32, %c0_i32_0 : i32, i32
  }
  func.func @transform_3(%arg0: i32) -> (i32, i32) {
    %c0_i32 = arith.constant 0 : i32
    %c0_i32_0 = arith.constant 0 : i32
    %c0_i32_1 = arith.constant 0 : i32
    return %c0_i32, %c0_i32_0 : i32, i32
  }
  func.func @transform_4(%arg0: i32) -> (i32, i32) {
    %c0_i32 = arith.constant 0 : i32
    %c0_i32_0 = arith.constant 0 : i32
    %c0_i32_1 = arith.constant 0 : i32
    return %c0_i32, %c0_i32_0 : i32, i32
  }
  func.func @transform_5(%arg0: i32) -> (i32, i32) {
    %c0_i32 = arith.constant 0 : i32
    %c0_i32_0 = arith.constant 0 : i32
    %c0_i32_1 = arith.constant 0 : i32
    return %c0_i32, %c0_i32_0 : i32, i32
  }
  func.func @transform_6(%arg0: i32) -> (i32, i32) {
    %c0_i32 = arith.constant 0 : i32
    %c0_i32_0 = arith.constant 0 : i32
    %c0_i32_1 = arith.constant 0 : i32
    return %c0_i32, %c0_i32_0 : i32, i32
  }
  func.func @transform_7(%arg0: i32) -> (i32, i32) {
    %c0_i32 = arith.constant 0 : i32
    %c0_i32_0 = arith.constant 0 : i32
    %c0_i32_1 = arith.constant 0 : i32
    return %c0_i32, %c0_i32_0 : i32, i32
  }
  func.func @transform_8(%arg0: i32) -> (i32, i32) {
    %c0_i32 = arith.constant 0 : i32
    %c0_i32_0 = arith.constant 0 : i32
    %c0_i32_1 = arith.constant 0 : i32
    return %c0_i32, %c0_i32_0 : i32, i32
  }
  func.func @transform_9(%arg0: i32) -> (i32, i32, i32) {
    %c0_i32 = arith.constant 0 : i32
    %c0_i32_0 = arith.constant 0 : i32
    %c0_i32_1 = arith.constant 0 : i32
    return %arg0, %c0_i32, %c0_i32_0 : i32, i32, i32
  }
}

</mosaic_0001>

<bundles_post_ra>
// kernel: coord_att.1
= control target key start
LH: loop header
LB: loop body
LE: loop exit
PB: predicated region body
PF: predicated region fallthrough
CT: control target
= control target key end

     0   :  { %s2585_s30 = smov 0   ;;  %s2771_s0 = inlined_call_operand.vmem [shape: f32[2,4,256], index: 0, kind: input, shape index: {}]   ;;  %s2772_s1 = inlined_call_operand.vmem [shape: bf16[256,32], index: 1, kind: input, shape index: {}]   ;;  %s2773_s2 = inlined_call_operand.vmem [shape: bf16[32,256], index: 2, kind: input, shape index: {}]   ;;  %s2774_s3 = inlined_call_operand.vmem [shape: f32[8,4], index: 3, kind: input, shape index: {}]   ;;  %s2775_s4 = inlined_call_operand.vmem [shape: f32[8,1], index: 4, kind: input, shape index: {}]   ;;  %s2776_s5 = inlined_call_operand.vmem [shape: f32[4,8], index: 5, kind: input, shape index: {}]   ;;  %s2777_s6 = inlined_call_operand.vmem [shape: f32[4,1], index: 6, kind: input, shape index: {}]   ;;  %s2778_s7 = inlined_call_operand.vmem [shape: f32[4,8], index: 7, kind: input, shape index: {}]   ;;  %s2779_s8 = inlined_call_operand.vmem [shape: f32[4,1], index: 8, kind: input, shape index: {}]   ;;  %s2780_s9 = inlined_call_operand.vmem [shape: f32[2,4,256], index: 9, kind: output, shape index: {}]  }
   0x1 LB: > { %s2231_s10 = sadd.s32 4294967295, %s2530_s30   ;;  %p2235_p0 = scmp.ge.s32.totalorder %s2530_s30, 1  ;;  %s2530_s30 = sphi %s2585_s30, %s19_s30  }
   0x2   : > { %p287_p1 = scmp.lt.s32.totalorder %s2530_s30, 3 }
   0x4   : > { %p288_p2 = pnand %p2235_p0, %p287_p1 }
   0x5   : > { %v2493_v0 = vld [vmem:[%s2772_s1 + $0x40] sm:$0xff] (!%p288_p2)   ;;  %v2495_v2 = vld [vmem:[%s2772_s1 + $0x48] sm:$0xff] (!%p288_p2)   ;;  %p323_p3 = scmp.lt.s32.totalorder (!%p288_p2), %s2231_s10, 1  ;;  %v2497_v4 = vld [vmem:[%s2772_s1 + $0x50] sm:$0xff] (!%p288_p2)   ;;  %v2532_v27 = vmov (!%p288_p2), 0.0   ;;  %vm2533_vm0 = vmmov (!%p288_p2), 0  }
   0x6   : > { %291 = sbr.rel (%p288_p2) target bundleno = 1069 (0x42d), region = 56  ;;  %v2494_v1 = vld [vmem:[%s2772_s1] sm:$0xff] (!%p288_p2)   ;;  %2270 = vmatprep.subr.bf16.mxu0 (!%p288_p2), %v2493_v0  ;;  %2292 = vmatprep.subr.bf16.mxu1 (!%p288_p2), %v2493_v0  ;;  %v2496_v3 = vld [vmem:[%s2772_s1 + $0x8] sm:$0xff] (!%p288_p2)   ;;  %v2498_v5 = vld [vmem:[%s2772_s1 + $0x10] sm:$0xff] (!%p288_p2)   ;;  %v2534_v29 = vmov (!%p288_p2), 0   ;;  %vm575_vm1 = vcmask (!%p288_p2), 31744  }
   0x7   : > { %2271 = vmatpush3.bf16.msra.mxu0 (!%p288_p2), %v2494_v1  ;;  %2293 = vmatpush3.bf16.msra.mxu1 (!%p288_p2), %v2494_v1  ;;  %v2499_v6 = vld [vmem:[%s2772_s1 + $0x58] sm:$0xff] (!%p288_p2)   ;;  %v2501_v8 = vld [vmem:[%s2772_s1 + $0x60] sm:$0xff] (!%p288_p2)   ;;  %v2503_v10 = vld [vmem:[%s2772_s1 + $0x68] sm:$0xff] (!%p288_p2)   ;;  %vm579_vm2 = vcmask (!%p288_p2), 1043456   ;;  %vm1039_vm3 = vcmask (!%p288_p2), 64512   ;;  %vm1987_vm5 = vcmask (!%p288_p2), 261120  }
   0x8   : > { %2272 = vmatprep.subr.bf16.mxu0 (!%p288_p2), %v2495_v2  ;;  %2294 = vmatprep.subr.bf16.mxu1 (!%p288_p2), %v2495_v2  ;;  %v2500_v7 = vld [vmem:[%s2772_s1 + $0x18] sm:$0xff] (!%p288_p2)   ;;  %v2502_v9 = vld [vmem:[%s2772_s1 + $0x20] sm:$0xff] (!%p288_p2)   ;;  %v2504_v14 = vld [vmem:[%s2772_s1 + $0x28] sm:$0xff] (!%p288_p2)  }
   0x9   : > { %v2505_v17 = vld [vmem:[%s2772_s1 + $0x70] sm:$0xff] (!%p288_p2)   ;;  %v2507_v21 = vld [vmem:[%s2772_s1 + $0x78] sm:$0xff] (!%p288_p2)   ;;  %v565_v28 = vld [vmem:[%s2775_s4] sm:$0xff] (!%p288_p2)  ;;  %2491 = vset.pattern.permute.xlu0 (!%p288_p2), %v2534_v29  ;;  %2492 = vset.pattern.permute.xlu1 (!%p288_p2), %v2534_v29 }
   0xa   : > { %v2506_v19 = vld [vmem:[%s2772_s1 + $0x30] sm:$0xff] (!%p288_p2)   ;;  %v2508_v23 = vld [vmem:[%s2772_s1 + $0x38] sm:$0xff] (!%p288_p2)   ;;  %572 = vperm.xlu0 (!%p288_p2), %2491, %v565_v28   ;;  %v567_v30 = vld [vmem:[%s2777_s6] sm:$0xf] (!%p288_p2) }
   0xb   : > { %2273 = vmatpush3.bf16.msra.mxu0 (!%p288_p2), %v2496_v3  ;;  %2295 = vmatpush3.bf16.msra.mxu1 (!%p288_p2), %v2496_v3  ;;  %v564_v31 = vld [vmem:[%s2774_s3] sm:$0xff] (!%p288_p2) }
   0xc   : > { %2274 = vmatprep.subr.bf16.mxu0 (!%p288_p2), %v2497_v4  ;;  %2296 = vmatprep.subr.bf16.mxu1 (!%p288_p2), %v2497_v4  ;;  %v577_v32 = vsel (!%p288_p2), %vm575_vm1, %v564_v31, 0  ;;  %v569_v56 = vld [vmem:[%s2779_s8] sm:$0xf] (!%p288_p2) }
   0xd   : > { %s2782_s10 = smov (!%p323_p3, %s2231_s10), 1  ;;  %v649_v33 = vand.u32 4294901760, %v577_v32  ;;  %1497 = vperm.xlu1 %2492, %v569_v56   ;;  %v566_v57 = vld [vmem:[%s2776_s5] sm:$0xf] }
   0xe   : > { %s2268_s25 = sshll.u32 %s2782_s10, 3  ;;  %1036 = vperm.xlu0 %2491, %v567_v30   ;;  %v1041_v58 = vsel %vm1039_vm3, %v566_v57, 0  ;;  %v568_v59 = vld [vmem:[%s2778_s7] sm:$0xf] }
   0xf   : > { %2275 = vmatpush3.bf16.msra.mxu0 %v2498_v5  ;;  %2297 = vmatpush3.bf16.msra.mxu1 %v2498_v5  ;;  %s327_s13 = scalar_lea.vmem %s2771_s0, %s2268_s25  ;;  %v650_v34 = vsub.f32 %v577_v32, %v649_v33  ;;  %v2700_v60 = vand.u32 4294901760, %v1041_v58  ;;  %v1501_v61 = vsel %vm1039_vm3, %v568_v59, 0  ;;  %s332_s14 = scalar_lea.vmem %s2780_s9, %s2268_s25 }
  0x10   : > { %2276 = vmatprep.subr.bf16.mxu0 %v2499_v6  ;;  %2298 = vmatprep.subr.bf16.mxu1 %v2499_v6  ;;  %v2634_v11 = vld [vmem:[%s327_s13] sm:$0xff]  ;;  %v2703_v1 = vand.u32 4294901760, %v1501_v61 }
  0x11   : > { %v368_v12 = vcombine.high %v2634_v11, %v2634_v11  ;;  %v370_v13 = vpack.c.bf16 %v2634_v11, %v2634_v11  ;;  %v651_v37 = vand.u32 4294901760, %v650_v34  ;;  %v1110_v0 = vsub.f32 %v1041_v58, %v2700_v60 }
  0x12   : > { %v1570_v6 = vsub.f32 %v1501_v61, %v2703_v1 }
  0x13   : > { %2277 = vmatpush3.bf16.msra.mxu0 %v2500_v7  ;;  %2299 = vmatpush3.bf16.msra.mxu1 %v2500_v7  ;;  %v371_v15 = vpack.c.bf16 %v368_v12, %v368_v12  ;;  %v372_v16 = vunpack.c.l.bf16 %v370_v13  ;;  %v652_v47 = vsub.f32 %v650_v34, %v651_v37  ;;  %v1111_v5 = vand.u32 4294901760, %v1110_v0 }
  0x14   : > { %2278 = vmatprep.subr.bf16.mxu0 %v2501_v8  ;;  %2300 = vmatprep.subr.bf16.mxu1 %v2501_v8 }
  0x15   : > { %v373_v18 = vunpack.c.l.bf16 %v371_v15  ;;  %552 = vmatprep.mubr.bf16.mxu1 %v371_v15  ;;  %v653_v50 = vand.u32 4294901760, %v652_v47 }
  0x17   : > { %2279 = vmatpush3.bf16.msra.mxu0 %v2502_v9  ;;  %2301 = vmatpush3.bf16.msra.mxu1 %v2502_v9  ;;  %v376_v20 = vcombine.low %v372_v16, %v373_v18  ;;  %v1112_v9 = vsub.f32 %v1110_v0, %v1111_v5 }
  0x18   : > { %2280 = vmatprep.subr.bf16.mxu0 %v2503_v10  ;;  %2302 = vmatprep.subr.bf16.mxu1 %v2503_v10  ;;  %v1571_v10 = vand.u32 4294901760, %v1570_v6 }
  0x19   : > { %v378_v22 = vsub.f32 %v2634_v11, %v376_v20 }
  0x1a   : > { %v1572_v15 = vsub.f32 %v1570_v6, %v1571_v10 }
  0x1b   : > { %2281 = vmatpush3.bf16.msra.mxu0 %v2504_v14  ;;  %2303 = vmatpush3.bf16.msra.mxu1 %v2504_v14  ;;  %v380_v24 = vcombine.high %v378_v22, %v378_v22  ;;  %v382_v26 = vpack.c.bf16 %v378_v22, %v378_v22  ;;  %v1113_v14 = vand.u32 4294901760, %v1112_v9  ;;  %v2510_v22 = vld [vmem:[%s2773_s2 + $0x4] ss:$8 sps:$4 sm:$0xff]  }
  0x1c   : > { %2282 = vmatprep.subr.bf16.mxu0 %v2505_v17  ;;  %2304 = vmatprep.subr.bf16.mxu1 %v2505_v17  ;;  %v1573_v18 = vand.u32 4294901760, %v1572_v15 }
  0x1d   : > { %v383_v25 = vpack.c.bf16 %v380_v24, %v380_v24  ;;  %v2513_v24 = vld [vmem:[%s2773_s2 + $0x14] ss:$8 sps:$4 sm:$0xff]  }
  0x1f   : > { %2283 = vmatpush3.bf16.msra.mxu0 %v2506_v19  ;;  %2305 = vmatpush3.bf16.msra.mxu1 %v2506_v19 }
  0x20   : > { %2284 = vmatprep.subr.bf16.mxu0 %v2507_v21  ;;  %2306 = vmatprep.subr.bf16.mxu1 %v2507_v21 }
  0x21   : > { %512 = vmatprep.mubr.bf16.mxu0 %v383_v25  ;;  %v2515_v25 = vld [vmem:[%s2773_s2 + $0x10] ss:$8 sps:$4 sm:$0xff]  }
  0x23   : > { %2285 = vmatpush3.bf16.msra.mxu0 %v2508_v23  ;;  %2307 = vmatpush3.bf16.msra.mxu1 %v2508_v23  ;;  %v2512_v23 = vld [vmem:[%s2773_s2] ss:$8 sps:$4 sm:$0xff]  }
  0x24   : > { %2350 = vmatprep.subr.mxu0 %v2532_v27  ;;  %2385 = vmatprep.subr.mxu1 %v2532_v27 }
  0x26   : > { %513 = vmatmul.mubr.bf16.vlgmr.msra.gmra.mrb[0].mxu0 %v382_v26  ;;  %553 = vmatmul.mubr.bf16.vlgmr.msra.gmra.mrb[0].mxu1 %v370_v13 }
  0x27   : > { %2352 = vmatprep.mubr.msk.f32.mxu0 %vm2533_vm0, %v2532_v27  ;;  %2387 = vmatprep.mubr.msk.f32.mxu1 %vm2533_vm0, %v2532_v27 }
  0x89   : > { %v573_v62 = vpop.permute.xlu0 %572 }
  0x8d   : > { %v1037_v28 = vpop.permute.xlu0 %1036 }
  0xf9   : > { %v2286_v35 = vpop.f32.mrb[0].mxu0  ;;  %v2308_v36 = vpop.f32.mrb[0].mxu1 }
  0xfa   : > { %v2287_v38 = vpop.f32.mrb[1].mxu0  ;;  %v2309_v39 = vpop.f32.mrb[1].mxu1 }
  0xfb   : > { %v2288_v40 = vadd.f32 %v2287_v38, %v2286_v35  ;;  %v2310_v41 = vadd.f32 %v2309_v39, %v2308_v36  ;;  %v2289_v42 = vpop.f32.mrb[2].mxu0  ;;  %v2311_v43 = vpop.f32.mrb[2].mxu1 }
  0xfc   : > { %v2290_v44 = vpop.f32.mrb[3].mxu0  ;;  %v2312_v45 = vpop.f32.mrb[3].mxu1  ;;  %v560_v42 = vlaneseq }
  0xfd   : > { %v555_v46 = vadd.f32 %v2310_v41, %v2288_v40 }
  0xfe   : > { %v561_v44 = vand.u32 127, %v560_v42 }
  0xff   : > { %v563_v48 = vmul.f32 0.0625, %v555_v46 }
 0x100   : > { %vm562_vm4 = vcmp.lt.s32.totalorder %v561_v44, 16 }
 0x101   : > { %v581_v49 = vsel %vm579_vm2, %v563_v48, 0 }
 0x102   : > { %v584_v51 = vand.u32 4294901760, %v581_v49 }
 0x104   : > { %v661_v52 = vsub.f32 %v581_v49, %v584_v51  ;;  %2351 = vmatpush3.msra.mxu0 %v584_v51 }
 0x105   : > { %2353 = vmatmul.mubr.f32.vlgmr.msra.gmra.mrb[4].mxu0 %v653_v50  ;;  %2355 = vmatprep.subr.mxu0 %v2532_v27 }
 0x106   : > { %v662_v53 = vand.u32 4294901760, %v661_v52  ;;  %2357 = vmatprep.mubr.msk.f32.mxu0 %vm2533_vm0, %v2532_v27 }
 0x108   : > { %v663_v54 = vsub.f32 %v661_v52, %v662_v53 }
 0x10a   : > { %v664_v55 = vand.u32 4294901760, %v663_v54 }
 0x10c   : > { %2356 = vmatpush3.msra.mxu0 %v664_v55 }
 0x10d   : > { %2358 = vmatmul.mubr.f32.vlgmr.msra.gmra.mrb[4].mxu0 %v649_v33  ;;  %2360 = vmatprep.subr.mxu0 %v2532_v27 }
 0x10e   : > { %2361 = vmatpush3.msra.mxu0 %v661_v52  ;;  %2362 = vmatprep.mubr.msk.f32.mxu0 %vm2533_vm0, %v2532_v27 }
 0x10f   : > { %2365 = vmatprep.subr.mxu0 %v2532_v27 }
 0x115   : > { %2363 = vmatmul.mubr.f32.vlgmr.msra.gmra.mrb[4].mxu0 %v650_v34  ;;  %v1498_v34 = vpop.permute.xlu1 %1497 }
 0x116   : > { %2366 = vmatpush3.msra.mxu0 %v584_v51  ;;  %2367 = vmatprep.mubr.msk.f32.mxu0 %vm2533_vm0, %v2532_v27 }
 0x117   : > { %2370 = vmatprep.subr.mxu0 %v2532_v27 }
 0x11d   : > { %2368 = vmatmul.mubr.f32.vlgmr.msra.gmra.mrb[4].mxu0 %v651_v37 }
 0x11e   : > { %2371 = vmatpush3.msra.mxu0 %v662_v53  ;;  %2372 = vmatprep.mubr.msk.f32.mxu0 %vm2533_vm0, %v2532_v27 }
 0x11f   : > { %2375 = vmatprep.subr.mxu0 %v2532_v27 }
 0x125   : > { %2373 = vmatmul.mubr.f32.vlgmr.msra.gmra.mrb[4].mxu0 %v649_v33 }
 0x126   : > { %2376 = vmatpush3.msra.mxu0 %v584_v51  ;;  %2377 = vmatprep.mubr.msk.f32.mxu0 %vm2533_vm0, %v2532_v27 }
 0x127   : > { %2380 = vmatprep.subr.mxu0 %v2532_v27 }
 0x12d   : > { %2378 = vmatmul.mubr.f32.vlgmr.msra.gmra.mrb[4].mxu0 %v649_v33 }
 0x12e   : > { %2382 = vmatprep.mubr.msk.f32.mxu0 %vm2533_vm0, %v2532_v27 }
 0x200   : > { %v1025_v63 = vpop.f32.mrb[4].mxu0 }
 0x201   : > { %v2440_v2 = vadd.f32 %v1025_v63, %v573_v62  ;;  %v2379_v3 = vpop.f32.mrb[5].mxu0 }
 0x203   : > { %v1029_v4 = vadd.f32 3.0, %v2440_v2 }
 0x205   : > { %v1030_v7 = vmax.f32 %v1029_v4, 0.0 }
 0x207   : > { %v1031_v8 = vmin.f32 %v1030_v7, 6.0 }
 0x209   : > { %v1032_v12 = vmul.f32 0.16666667, %v1031_v8 }
 0x20b   : > { %v1033_v13 = vmul.f32 %v2440_v2, %v1032_v12 }
 0x20d   : > { %v1044_v16 = vand.u32 4294901760, %v1033_v13 }
 0x20f   : > { %v1121_v17 = vsub.f32 %v1033_v13, %v1044_v16  ;;  %2381 = vmatpush3.msra.mxu0 %v1044_v16 }
 0x210   : > { %2383 = vmatmul.mubr.f32.vlgmr.msra.gmra.mrb[6].mxu0 %v1113_v14  ;;  %2410 = vmatprep.subr.mxu0 %v2532_v27 }
 0x211   : > { %2411 = vmatpush3.msra.mxu0 %v1044_v16  ;;  %2412 = vmatprep.mubr.msk.f32.mxu0 %vm2533_vm0, %v2532_v27  ;;  %v1122_v19 = vand.u32 4294901760, %v1121_v17 }
 0x212   : > { %2415 = vmatprep.subr.mxu0 %v2532_v27 }
 0x213   : > { %v1123_v20 = vsub.f32 %v1121_v17, %v1122_v19 }
 0x214   : > { %2413 = vmatmul.mubr.f32.vlgmr.msra.gmra.mrb[8].mxu0 %v1573_v18 }
 0x215   : > { %v1124_v21 = vand.u32 4294901760, %v1123_v20  ;;  %2417 = vmatprep.mubr.msk.f32.mxu0 %vm2533_vm0, %v2532_v27 }
 0x217   : > { %2386 = vmatpush3.msra.mxu1 %v1124_v21  ;;  %2416 = vmatpush3.msra.mxu0 %v1124_v21 }
 0x218   : > { %2388 = vmatmul.mubr.f32.vlgmr.msra.gmra.mrb[4].mxu1 %v2700_v60  ;;  %2390 = vmatprep.subr.mxu1 %v2532_v27 }
 0x219   : > { %2391 = vmatpush3.msra.mxu1 %v1121_v17  ;;  %2420 = vmatprep.subr.mxu0 %v2532_v27 }
 0x21a   : > { %2392 = vmatprep.mubr.msk.f32.mxu1 %vm2533_vm0, %v2532_v27  ;;  %2395 = vmatprep.subr.mxu1 %v2532_v27 }
 0x21c   : > { %2418 = vmatmul.mubr.f32.vlgmr.msra.gmra.mrb[8].mxu0 %v2703_v1 }
 0x21d   : > { %2421 = vmatpush3.msra.mxu0 %v1121_v17  ;;  %2422 = vmatprep.mubr.msk.f32.mxu0 %vm2533_vm0, %v2532_v27 }
 0x21e   : > { %2425 = vmatprep.subr.mxu0 %v2532_v27 }
 0x220   : > { %2393 = vmatmul.mubr.f32.vlgmr.msra.gmra.mrb[4].mxu1 %v1110_v0 }
 0x221   : > { %2396 = vmatpush3.msra.mxu1 %v1044_v16  ;;  %2397 = vmatprep.mubr.msk.f32.mxu1 %vm2533_vm0, %v2532_v27 }
 0x222   : > { %2400 = vmatprep.subr.mxu1 %v2532_v27 }
 0x224   : > { %2423 = vmatmul.mubr.f32.vlgmr.msra.gmra.mrb[8].mxu0 %v1570_v6 }
 0x225   : > { %2426 = vmatpush3.msra.mxu0 %v1044_v16  ;;  %2427 = vmatprep.mubr.msk.f32.mxu0 %vm2533_vm0, %v2532_v27 }
 0x226   : > { %2430 = vmatprep.subr.mxu0 %v2532_v27 }
 0x228   : > { %2398 = vmatmul.mubr.f32.vlgmr.msra.gmra.mrb[4].mxu1 %v1111_v5 }
 0x229   : > { %2401 = vmatpush3.msra.mxu1 %v1122_v19  ;;  %2402 = vmatprep.mubr.msk.f32.mxu1 %vm2533_vm0, %v2532_v27 }
 0x22a   : > { %2405 = vmatprep.subr.mxu1 %v2532_v27 }
 0x22c   : > { %2428 = vmatmul.mubr.f32.vlgmr.msra.gmra.mrb[8].mxu0 %v1571_v10 }
 0x22d   : > { %2431 = vmatpush3.msra.mxu0 %v1122_v19  ;;  %2432 = vmatprep.mubr.msk.f32.mxu0 %vm2533_vm0, %v2532_v27 }
 0x22e   : > { %2435 = vmatprep.subr.mxu0 %v2532_v27 }
 0x230   : > { %2403 = vmatmul.mubr.f32.vlgmr.msra.gmra.mrb[4].mxu1 %v2700_v60 }
 0x231   : > { %2406 = vmatpush3.msra.mxu1 %v1044_v16  ;;  %2407 = vmatprep.mubr.msk.f32.mxu1 %vm2533_vm0, %v2532_v27 }
 0x232   : > { %1991 = vmatprep.subr.bf16.mxu1 %v2510_v22 }
 0x234   : > { %2433 = vmatmul.mubr.f32.vlgmr.msra.gmra.mrb[8].mxu0 %v2703_v1 }
 0x235   : > { %2436 = vmatpush3.msra.mxu0 %v1044_v16  ;;  %2437 = vmatprep.mubr.msk.f32.mxu0 %vm2533_vm0, %v2532_v27 }
 0x238   : > { %2408 = vmatmul.mubr.f32.vlgmr.msra.gmra.mrb[4].mxu1 %v2700_v60 }
 0x239   : > { %2023 = vmatprep.mubr.bf16.mxu1 %v2534_v29  ;;  %1992 = vmatpush1.bf16.msra.mxu1 %v2512_v23 }
 0x23a   : > { %1993 = vmatprep.subr.bf16.mxu1 %v2513_v24 }
 0x23c   : > { %2438 = vmatmul.mubr.f32.vlgmr.msra.gmra.mrb[8].mxu0 %v2703_v1 }
 0x23d   : > { %1994 = vmatpush1.bf16.msra.mxu1 %v2515_v25 }
 0x23e   : > { %2035 = vmatprep.subr.bf16.mxu1 %v2510_v22 }
 0x2e3   : > { %v1115_v26 = vpop.f32.mrb[6].mxu0 }
 0x2e4   : > { %v2384_v27 = vpop.f32.mrb[7].mxu0  ;;  %v1116_v30 = vadd.f32 %v1115_v26, %v1037_v28 }
 0x30b   : > { %v1485_v31 = vpop.f32.mrb[4].mxu1 }
 0x30c   : > { %v2442_v32 = vadd.f32 %v1485_v31, %v1116_v30  ;;  %v2409_v33 = vpop.f32.mrb[5].mxu1 }
 0x30e   : > { %v2256_v35 = vmul.f32 -1.442695, %v2442_v32 }
 0x30f   : > { %v1945_v36 = vpop.f32.mrb[8].mxu0 }
 0x310   : > { %2516 = vpow2.f32 %v2256_v35  ;;  %v2443_v37 = vadd.f32 %v1945_v36, %v1498_v34  ;;  %v2439_v38 = vpop.f32.mrb[9].mxu0 }
 0x312   : > { %v2257_v39 = vmul.f32 -1.442695, %v2443_v37 }
 0x314   : > { %2518 = vpow2.f32 %v2257_v39 }
 0x31a   : > { %v2517_v40 = vpop.eup %2516 }
 0x31b   : > { %v1492_v41 = vadd.f32 1.0, %v2517_v40 }
 0x31d   : > { %2520 = vrcp.f32 %v1492_v41 }
 0x31e   : > { %v2519_v43 = vpop.eup %2518 }
 0x31f   : > { %v1952_v45 = vadd.f32 1.0, %v2519_v43 }
 0x321   : > { %2522 = vrcp.f32 %v1952_v45 }
 0x327   : > { %v2521_v46 = vpop.eup %2520 }
 0x328   : > { %v1957_v47 = vsel %vm562_vm4, %v2521_v46, 0.0 }
 0x329   : > { %v1963_v48 = vpack.c.bf16 %v1957_v47, %v1957_v47 }
 0x32b   : > { %v1964_v49 = vunpack.c.l.bf16 %v1963_v48  ;;  %v2523_v52 = vpop.eup %2522 }
 0x32c   : > { %v1958_v53 = vsel %vm562_vm4, 0.0, %v2523_v52 }
 0x32d   : > { %v1965_v50 = vsub.f32 %v1957_v47, %v1964_v49  ;;  %v2076_v54 = vpack.c.bf16 %v1958_v53, %v1958_v53 }
 0x32f   : > { %v1966_v51 = vpack.c.bf16 %v1965_v50, %v1965_v50  ;;  %v2077_v55 = vunpack.c.l.bf16 %v2076_v54 }
 0x331   : > { %2262 = vmatmul.mubr.msk.bf16.vlgmr.msra.gmra.mrb[8].mxu1 %vm1987_vm5, %v1966_v51  ;;  %v2078_v56 = vsub.f32 %v1958_v53, %v2077_v55 }
 0x332   : > { %2036 = vmatpush1.bf16.msra.mxu1 %v2512_v23  ;;  %2067 = vmatprep.mubr.bf16.mxu1 %v2534_v29 }
 0x333   : > { %2037 = vmatprep.subr.bf16.mxu1 %v2513_v24  ;;  %v2079_v57 = vpack.c.bf16 %v2078_v56, %v2078_v56 }
 0x336   : > { %2038 = vmatpush1.bf16.msra.mxu1 %v2515_v25 }
 0x337   : > { %2083 = vmatprep.subr.bf16.mxu1 %v2510_v22 }
 0x33d   : > { %2263 = vmatmul.mubr.msk.bf16.vlgmr.msra.gmra.mrb[8].mxu1 %vm1987_vm5, %v1963_v48 }
 0x33e   : > { %2084 = vmatpush1.bf16.msra.mxu1 %v2512_v23  ;;  %2115 = vmatprep.mubr.bf16.mxu1 %v2534_v29 }
 0x33f   : > { %2085 = vmatprep.subr.bf16.mxu1 %v2513_v24 }
 0x342   : > { %2086 = vmatpush1.bf16.msra.mxu1 %v2515_v25 }
 0x343   : > { %2127 = vmatprep.subr.bf16.mxu1 %v2510_v22 }
 0x345   : > { %2264 = vmatmul.mubr.msk.bf16.vlgmr.msra.gmra.mrb[12].mxu1 %vm1987_vm5, %v2079_v57 }
 0x346   : > { %2128 = vmatpush1.bf16.msra.mxu1 %v2512_v23  ;;  %2159 = vmatprep.mubr.bf16.mxu1 %v2534_v29 }
 0x347   : > { %2129 = vmatprep.subr.bf16.mxu1 %v2513_v24 }
 0x34a   : > { %2130 = vmatpush1.bf16.msra.mxu1 %v2515_v25 }
 0x351   : > { %2265 = vmatmul.mubr.msk.bf16.vlgmr.msra.gmra.mrb[12].mxu1 %vm1987_vm5, %v2076_v54 }
 0x410   : > { %v2069_v58 = vpop.f32.mrb[8].mxu1 }
 0x411   : > { %v2071_v59 = vpop.f32.mrb[9].mxu1 }
 0x412   : > { %v2073_v60 = vpop.f32.mrb[10].mxu1 }
 0x413   : > { %v2074_v61 = vpop.f32.mrb[11].mxu1 }
 0x424   : > { %v2161_v62 = vpop.f32.mrb[12].mxu1 }
 0x425   : > { %v2168_v63 = vmul.f32 %v2161_v62, %v2069_v58  ;;  %v2163_v0 = vpop.f32.mrb[13].mxu1 }
 0x426   : > { %v2169_v1 = vmul.f32 %v2163_v0, %v2071_v59  ;;  %v2165_v2 = vpop.f32.mrb[14].mxu1 }
 0x427   : > { %v2166_v3 = vpop.f32.mrb[15].mxu1 }
 0x428   : > { %v2172_v4 = vcombine.low %v2168_v63, %v2169_v1 }
 0x42a   : > { %v2174_v29 = vmul.f32 %v2172_v4, %v2634_v11 }
 0x42c   : > { %2175 = vst [vmem:[%s332_s14] sm:$0xff] %v2174_v29 }
 0x42d PF: > { %s19_s30 = sadd.s32 1, %s2530_s30  }
 0x42e   : > { %p16_p4 = scmp.ge.s32.totalorder %s19_s30, 4  }
 0x430   :  { %18 = sbr.rel (!%p16_p4) target bundleno = 1 (0x1), region = 86 }

</bundles_post_ra>
